<compile_context>
chip_gen: v5e
topology: v5e:2x2
jax: 0.10.0
libtpu: 0.0.40
codegen_flags: <defaults>
</compile_context>

<pallas_src>
import jax
import jax.numpy as jnp
from jax import lax
from jax.experimental import pallas as pl
from jax.experimental.pallas import tpu as pltpu


def _round_up(x, m):
    return ((x + m - 1) // m) * m


def _mh_mlp_kernel(x_ref, w1_ref, b1_ref, w2_ref, b2_ref, o_ref):
    # x_ref : (tb, in_p)        bf16
    # w1_ref: (G, in_p, hid_p)  bf16      b1_ref: (G, 1, hid_p) f32
    # w2_ref: (G, hid_p, st_p)  bf16      b2_ref: (G, 1, st_p)  f32
    # o_ref : (G, tb, st_p)     f32   (lane-dense slab per grid step)
    g = w1_ref.shape[0]
    tb = x_ref.shape[0]

    x = x_ref[...]
    xg = jnp.broadcast_to(x[None, :, :], (g, tb, x.shape[1]))

    # First linear, batched over the G heads of this block (f32 accumulation).
    h = lax.dot_general(
        xg, w1_ref[...],
        dimension_numbers=(((2,), (1,)), ((0,), (0,))),
        preferred_element_type=jnp.float32,
    ) + b1_ref[...]

    # ELU (alpha=1), f32 math; clamp exp arg to avoid overflow on + side.
    a = jnp.where(h > 0, h, jnp.exp(jnp.minimum(h, 0.0)) - 1.0)

    # Second linear, batched over the G heads.
    y = lax.dot_general(
        a.astype(w2_ref.dtype), w2_ref[...],
        dimension_numbers=(((2,), (1,)), ((0,), (0,))),
        preferred_element_type=jnp.float32,
    ) + b2_ref[...]

    o_ref[...] = y.astype(o_ref.dtype)


def _pick_head_block(num_head, in_p, hid_p, st_p, tb, budget_bytes=24 << 20):
    """Largest divisor of num_head whose per-step VMEM footprint fits budget."""
    best = 1
    for g in range(1, num_head + 1):
        if num_head % g:
            continue
        weights = 2 * g * (in_p * hid_p + hid_p * st_p) * 2   # double-buffered bf16
        biases = 2 * g * (hid_p + st_p) * 4
        acts = g * tb * (in_p * 2 + 2 * hid_p * 4 + st_p * 4)  # xg + h/a + y
        out = 2 * g * tb * st_p * 4                            # double-buffered out
        xbuf = 2 * tb * in_p * 2
        if weights + biases + acts + out + xbuf <= budget_bytes:
            best = g
    return best


def multi_head_mlp(x, w1, b1, w2, b2):
    """x: (B, in_sz); w1: (H, in_sz, hidden); b1: (H, hidden);
    w2: (H, hidden, state); b2: (H, state).  Returns (B, H, state).

    Weights are stored (in, out), i.e. PyTorch nn.Linear's (out, in) weight
    pre-transposed, so the kernel computes plain x @ W + b per head."""
    B, in_sz = x.shape
    H, _, hidden = w1.shape
    state = w2.shape[-1]

    # TPU-friendly padding: sublane multiple of 8, lane multiple of 128.
    in_p = _round_up(in_sz, 128)
    hid_p = _round_up(hidden, 128)
    st_p = _round_up(state, 128)
    B_p = _round_up(B, 8)
    tb = min(B_p, 256)              # batch tile: keeps v7x 64 MiB VMEM safe at large B
    B_p = _round_up(B_p, tb)

    G = _pick_head_block(H, in_p, hid_p, st_p, tb)

    f32, bf16 = jnp.float32, jnp.bfloat16
    x_p = jnp.pad(x.astype(f32), ((0, B_p - B), (0, in_p - in_sz))).astype(bf16)
    w1_p = jnp.pad(w1.astype(f32),
                   ((0, 0), (0, in_p - in_sz), (0, hid_p - hidden))).astype(bf16)
    w2_p = jnp.pad(w2.astype(f32),
                   ((0, 0), (0, hid_p - hidden), (0, st_p - state))).astype(bf16)
    b1_p = jnp.pad(b1.astype(f32), ((0, 0), (0, hid_p - hidden)))[:, None, :]
    b2_p = jnp.pad(b2.astype(f32), ((0, 0), (0, st_p - state)))[:, None, :]

    grid = (H // G, B_p // tb)

    out_p = pl.pallas_call(
        _mh_mlp_kernel,
        out_shape=jax.ShapeDtypeStruct((H, B_p, st_p), f32),
        grid_spec=pltpu.PrefetchScalarGridSpec(
            num_scalar_prefetch=0,
            grid=grid,
            in_specs=[
                pl.BlockSpec((tb, in_p), lambda h, b: (b, 0)),
                pl.BlockSpec((G, in_p, hid_p), lambda h, b: (h, 0, 0)),
                pl.BlockSpec((G, 1, hid_p), lambda h, b: (h, 0, 0)),
                pl.BlockSpec((G, hid_p, st_p), lambda h, b: (h, 0, 0)),
                pl.BlockSpec((G, 1, st_p), lambda h, b: (h, 0, 0)),
            ],
            out_specs=pl.BlockSpec((G, tb, st_p), lambda h, b: (h, b, 0)),
        ),
        compiler_params=pltpu.CompilerParams(
            dimension_semantics=("parallel", "parallel"),
            vmem_limit_bytes=48 * 1024 * 1024,
        ),
    )(x_p, w1_p, b1_p, w2_p, b2_p)

    # (H, B_p, st_p) -> (B, H, state): slice off padding, transpose in wrapper.
    out = jnp.transpose(out_p[:, :B, :state], (1, 0, 2))
    return out.astype(x.dtype)


def reference(x, w1, b1, w2, b2):
    # Pure-JAX (f32) reference mirroring the PyTorch forward.
    h = jnp.einsum("bi,hio->hbo", x, w1) + b1[:, None, :]
    a = jnp.where(h > 0, h, jnp.exp(jnp.minimum(h, 0.0)) - 1.0)
    y = jnp.einsum("hbo,hos->hbs", a, w2) + b2[:, None, :]
    return jnp.transpose(y, (1, 0, 2))  # (B, H, state)


if __name__ == "__main__":
    # Small shapes consistent with the module's forward: x is (batch, in_sz).
    batch, in_sz, hidden_sz, state_sz, num_head = 2, 16, 32, 8, 4

    key = jax.random.PRNGKey(0)
    kx, k1, k2, k3, k4 = jax.random.split(key, 5)

    x = jax.random.normal(kx, (batch, in_sz), dtype=jnp.float32)
    # Deterministic synthetic parameters (PyTorch stores (out,in); kept as (in,out)).
    w1 = jax.random.normal(k1, (num_head, in_sz, hidden_sz), dtype=jnp.float32) * 0.1
    b1 = jax.random.normal(k2, (num_head, hidden_sz), dtype=jnp.float32) * 0.1
    w2 = jax.random.normal(k3, (num_head, hidden_sz, state_sz), dtype=jnp.float32) * 0.1
    b2 = jax.random.normal(k4, (num_head, state_sz), dtype=jnp.float32) * 0.1

    out = jax.block_until_ready(multi_head_mlp(x, w1, b1, w2, b2))

    ref = reference(x, w1, b1, w2, b2)
    assert out.shape == (batch, num_head, state_sz), out.shape
    max_err = float(jnp.max(jnp.abs(out - ref)))
    # bf16 inputs with f32 accumulation -> loose-ish tolerance vs f32 reference.
    assert jnp.allclose(out, ref, atol=2e-2, rtol=2e-2), max_err
    print("KERNEL_OK")
</pallas_src>

<mosaic_0001>
module attributes {stable_mosaic.version = 11 : i64} {
  func.func @_mh_mlp_kernel(%arg0: i32, %arg1: i32, %arg2: memref<8x128xbf16, #tpu.memory_space<vmem>>, %arg3: memref<4x128x128xbf16, #tpu.memory_space<vmem>>, %arg4: memref<4x1x128xf32, #tpu.memory_space<vmem>>, %arg5: memref<4x128x128xbf16, #tpu.memory_space<vmem>>, %arg6: memref<4x1x128xf32, #tpu.memory_space<vmem>>, %arg7: memref<4x8x128xf32, #tpu.memory_space<vmem>>) attributes {dimension_semantics = [#tpu.dimension_semantics<parallel>, #tpu.dimension_semantics<parallel>], iteration_bounds = array<i64: 1, 1>, scalar_prefetch = 0 : i64, scratch_operands = 0 : i64, tpu.core_type = #tpu.core_type<tc>, window_params = [{transform_indices = @transform_0, window_bounds = array<i64: 8, 128>}, {transform_indices = @transform_1, window_bounds = array<i64: 4, 128, 128>}, {transform_indices = @transform_2, window_bounds = array<i64: 4, 1, 128>}, {transform_indices = @transform_3, window_bounds = array<i64: 4, 128, 128>}, {transform_indices = @transform_4, window_bounds = array<i64: 4, 1, 128>}, {transform_indices = @transform_5, window_bounds = array<i64: 4, 8, 128>}]} {
    %c0 = arith.constant 0 : index
    %c0_0 = arith.constant 0 : index
    %0 = vector.load %arg2[%c0, %c0_0] : memref<8x128xbf16, #tpu.memory_space<vmem>>, vector<8x128xbf16>
    %1 = vector.shape_cast %0 : vector<8x128xbf16> to vector<1x8x128xbf16>
    %2 = vector.shape_cast %1 : vector<1x8x128xbf16> to vector<1x8x128xbf16>
    %3 = vector.broadcast %2 : vector<1x8x128xbf16> to vector<4x8x128xbf16>
    %c0_1 = arith.constant 0 : index
    %c0_2 = arith.constant 0 : index
    %c0_3 = arith.constant 0 : index
    %4 = vector.load %arg3[%c0_1, %c0_2, %c0_3] : memref<4x128x128xbf16, #tpu.memory_space<vmem>>, vector<4x128x128xbf16>
    %cst = arith.constant dense<0.000000e+00> : vector<4x8x128xf32>
    %5 = tpu.matmul %3, %4, %cst {dimension_numbers = #tpu.dot_dimension_numbers<[2], [1], [1], [2], [0, 0, 0, 1, 1, 2], [0], [0]>} : vector<4x8x128xbf16>, vector<4x128x128xbf16>, vector<4x8x128xf32> -> vector<4x8x128xf32>
    %c0_4 = arith.constant 0 : index
    %c0_5 = arith.constant 0 : index
    %c0_6 = arith.constant 0 : index
    %6 = vector.load %arg4[%c0_4, %c0_5, %c0_6] : memref<4x1x128xf32, #tpu.memory_space<vmem>>, vector<4x1x128xf32>
    %7 = vector.broadcast %6 : vector<4x1x128xf32> to vector<4x8x128xf32>
    %8 = arith.addf %5, %7 : vector<4x8x128xf32>
    %cst_7 = arith.constant 0.000000e+00 : f32
    %9 = vector.broadcast %cst_7 : f32 to vector<4x8x128xf32>
    %10 = arith.cmpf ogt, %8, %9 : vector<4x8x128xf32>
    %cst_8 = arith.constant 0.000000e+00 : f32
    %11 = vector.broadcast %cst_8 : f32 to vector<4x8x128xf32>
    %12 = arith.minimumf %8, %11 : vector<4x8x128xf32>
    %13 = math.exp %12 : vector<4x8x128xf32>
    %cst_9 = arith.constant 1.000000e+00 : f32
    %14 = vector.broadcast %cst_9 : f32 to vector<4x8x128xf32>
    %15 = arith.subf %13, %14 : vector<4x8x128xf32>
    %16 = arith.select %10, %8, %15 : vector<4x8x128xi1>, vector<4x8x128xf32>
    %17 = arith.truncf %16 : vector<4x8x128xf32> to vector<4x8x128xbf16>
    %c0_10 = arith.constant 0 : index
    %c0_11 = arith.constant 0 : index
    %c0_12 = arith.constant 0 : index
    %18 = vector.load %arg5[%c0_10, %c0_11, %c0_12] : memref<4x128x128xbf16, #tpu.memory_space<vmem>>, vector<4x128x128xbf16>
    %cst_13 = arith.constant dense<0.000000e+00> : vector<4x8x128xf32>
    %19 = tpu.matmul %17, %18, %cst_13 {dimension_numbers = #tpu.dot_dimension_numbers<[2], [1], [1], [2], [0, 0, 0, 1, 1, 2], [0], [0]>} : vector<4x8x128xbf16>, vector<4x128x128xbf16>, vector<4x8x128xf32> -> vector<4x8x128xf32>
    %c0_14 = arith.constant 0 : index
    %c0_15 = arith.constant 0 : index
    %c0_16 = arith.constant 0 : index
    %20 = vector.load %arg6[%c0_14, %c0_15, %c0_16] : memref<4x1x128xf32, #tpu.memory_space<vmem>>, vector<4x1x128xf32>
    %21 = vector.broadcast %20 : vector<4x1x128xf32> to vector<4x8x128xf32>
    %22 = arith.addf %19, %21 : vector<4x8x128xf32>
    %c0_17 = arith.constant 0 : index
    %c0_18 = arith.constant 0 : index
    %c0_19 = arith.constant 0 : index
    %23 = vector.load %arg7[%c0_17, %c0_18, %c0_19] : memref<4x8x128xf32, #tpu.memory_space<vmem>>, vector<4x8x128xf32>
    tpu.vector_store %arg7[%c0_17, %c0_18, %c0_19], %22 {strides = array<i32>} : memref<4x8x128xf32, #tpu.memory_space<vmem>>, vector<4x8x128xf32>,
    return
  }
  func.func @transform_0(%arg0: i32, %arg1: i32) -> (i32, i32) {
    %c0_i32 = arith.constant 0 : i32
    %c0_i32_0 = arith.constant 0 : i32
    return %arg1, %c0_i32 : i32, i32
  }
  func.func @transform_1(%arg0: i32, %arg1: i32) -> (i32, i32, i32) {
    %c0_i32 = arith.constant 0 : i32
    %c0_i32_0 = arith.constant 0 : i32
    %c0_i32_1 = arith.constant 0 : i32
    return %arg0, %c0_i32, %c0_i32_0 : i32, i32, i32
  }
  func.func @transform_2(%arg0: i32, %arg1: i32) -> (i32, i32, i32) {
    %c0_i32 = arith.constant 0 : i32
    %c0_i32_0 = arith.constant 0 : i32
    %c0_i32_1 = arith.constant 0 : i32
    return %arg0, %c0_i32, %c0_i32_0 : i32, i32, i32
  }
  func.func @transform_3(%arg0: i32, %arg1: i32) -> (i32, i32, i32) {
    %c0_i32 = arith.constant 0 : i32
    %c0_i32_0 = arith.constant 0 : i32
    %c0_i32_1 = arith.constant 0 : i32
    return %arg0, %c0_i32, %c0_i32_0 : i32, i32, i32
  }
  func.func @transform_4(%arg0: i32, %arg1: i32) -> (i32, i32, i32) {
    %c0_i32 = arith.constant 0 : i32
    %c0_i32_0 = arith.constant 0 : i32
    %c0_i32_1 = arith.constant 0 : i32
    return %arg0, %c0_i32, %c0_i32_0 : i32, i32, i32
  }
  func.func @transform_5(%arg0: i32, %arg1: i32) -> (i32, i32, i32) {
    %c0_i32 = arith.constant 0 : i32
    %c0_i32_0 = arith.constant 0 : i32
    return %arg0, %arg1, %c0_i32 : i32, i32, i32
  }
}

</mosaic_0001>

<bundles_post_ra>
// kernel: tpu_custom_call.1
= control target key start
LH: loop header
LB: loop body
LE: loop exit
PB: predicated region body
PF: predicated region fallthrough
CT: control target
= control target key end

     0   :  { %10 = vsyncpa [#allocation3], 0  ;;  %s1363_s0 = inlined_call_operand.hbm [shape: bf16[8,128], index: 0, kind: input, shape index: {}]   ;;  %s1364_s1 = inlined_call_operand.hbm [shape: bf16[4,128,128], index: 1, kind: input, shape index: {}]   ;;  %s1365_s2 = inlined_call_operand.hbm [shape: f32[4,1,128], index: 2, kind: input, shape index: {}]   ;;  %s1366_s3 = inlined_call_operand.hbm [shape: bf16[4,128,128], index: 3, kind: input, shape index: {}]   ;;  %s1367_s4 = inlined_call_operand.hbm [shape: f32[4,1,128], index: 4, kind: input, shape index: {}]   ;;  %s1368_s5 = inlined_call_operand.hbm [shape: f32[4,8,128], index: 5, kind: output, shape index: {}]  }
   0x1   :  { %11 = vsyncpa [#allocation6], 0 }
   0x2   :  { %12 = vsyncpa [#allocation9], 0  ;;  %s29_s20 = sshll.u32 %s1364_s1, 4  ;;  %s30_s20 = int_to_ptr.hbm [resolvable:$true] %s29_s20 }
   0x3   :  { %13 = vsyncpa [#allocation4], 0  ;;  %s1303_s21 = smov [#allocation5]   ;;  %s55_s25 = sshll.u32 %s1366_s3, 4  ;;  %s56_s25 = int_to_ptr.hbm [resolvable:$true] %s55_s25 }
   0x4   :  { %s31_s22 = sshll.u32 %s1303_s21, 4  ;;  %s1304_s26 = smov 64   ;;  %s32_s22 = int_to_ptr.vmem [resolvable:$true] %s31_s22 }
   0x5   :  { %s1305_s27 = smov 4   ;;  %s1306_s28 = smov [#allocation8]  }
   0x6   :  { %37 = dma.hbm_to_vmem [thread:$0]  %s30_s20, 4096, %s32_s22, [#allocation6], %s1304_s26, %s1304_s26, %s1305_s27  }
   0x7   :  { %s57_s29 = sshll.u32 %s1306_s28, 4  ;;  %s19_s7 = sshll.u32 %s1363_s0, 4  ;;  %s58_s29 = int_to_ptr.vmem [resolvable:$true] %s57_s29  ;;  %s20_s7 = int_to_ptr.hbm [resolvable:$true] %s19_s7 }
   0x8   :  { %63 = dma.hbm_to_vmem [thread:$0]  %s56_s25, 4096, %s58_s29, [#allocation9], %s1304_s26, %s1304_s26, %s1305_s27  }
   0x9   :  { %s42_s9 = sshll.u32 %s1365_s2, 4  ;;  %s1307_s10 = smov [#allocation2]   ;;  %s43_s9 = int_to_ptr.hbm [resolvable:$true] %s42_s9 }
   0xa   :  { %s21_s11 = sshll.u32 %s1307_s10, 4  ;;  %s1308_s3 = smov [#allocation7]   ;;  %s22_s11 = int_to_ptr.vmem [resolvable:$true] %s21_s11 }
   0xb   :  { %24 = dma.hbm_to_vmem [thread:$0]  %s20_s7, 64, %s22_s11, [#allocation3]  }
   0xc   :  { %s44_s12 = sshll.u32 %s1308_s3, 4  ;;  %s1309_s13 = smov 16   ;;  %s45_s12 = int_to_ptr.vmem [resolvable:$true] %s44_s12 }
   0xd   :  { %s1310_s14 = smov 1   ;;  %s68_s16 = sshll.u32 %s1367_s4, 4  ;;  %s69_s16 = int_to_ptr.hbm [resolvable:$true] %s68_s16 }
   0xe   :  { %50 = dma.hbm_to_vmem [thread:$0]  %s43_s9, 64, %s45_s12, [#allocation6], %s1309_s13, %s1309_s13, %s1310_s14  }
   0xf   :  { %s1311_s17 = smov [#allocation10]  }
  0x10   :  { %s70_s18 = sshll.u32 %s1311_s17, 4  ;;  %s71_s18 = int_to_ptr.vmem [resolvable:$true] %s70_s18 }
  0x11   :  { %76 = dma.hbm_to_vmem [thread:$0]  %s69_s16, 64, %s71_s18, [#allocation9], %s1309_s13, %s1309_s13, %s1310_s14  }
  0x12   :  { %1295 = dma.done.wait [#allocation3], 64  }
  0x13   :  { %1296 = vsyncadd [#allocation3], 4294967232 }
  0x14   :  { %1297 = dma.done.wait [#allocation6], 4160  }
  0x15   :  { %1298 = vsyncadd [#allocation6], 4294963136 }
  0x16   :  { %1299 = dma.done.wait [#allocation9], 4160  }
  0x17   :  { %1300 = vsyncadd [#allocation9], 4294963136  ;;  %v1066_v0 = vld [vmem:[#allocation5 + $0x38] sm:$0xff]  ;;  %v1065_v4 = vld [vmem:[#allocation5 + $0x30] sm:$0xff]  ;;  %s1312_s2 = smov [#allocation11]   ;;  %s784_s21 = sshll.u32 %s1368_s5, 4  ;;  %s785_s21 = int_to_ptr.hbm [resolvable:$true] %s784_s21 }
  0x18   :  { %v1074_v1 = vld [vmem:[#allocation5 + $0x78] sm:$0xff]  ;;  %226 = vmatpush.bf16.msra.mxu0 %v1066_v0  ;;  %v1073_v5 = vld [vmem:[#allocation5 + $0x70] sm:$0xff]  ;;  %v1064_v8 = vld [vmem:[#allocation5 + $0x28] sm:$0xff]  ;;  %s782_s4 = sshll.u32 %s1312_s2, 4  ;;  %s1313_s22 = smov 128   ;;  %s783_s4 = int_to_ptr.vmem [resolvable:$true] %s782_s4 }
  0x19   :  { %v1082_v2 = vld [vmem:[#allocation5 + $0xb8] sm:$0xff]  ;;  %287 = vmatpush.bf16.msra.mxu1 %v1074_v1  ;;  %v1081_v6 = vld [vmem:[#allocation5 + $0xb0] sm:$0xff]  ;;  %v1072_v9 = vld [vmem:[#allocation5 + $0x68] sm:$0xff]  ;;  %s1314_s23 = smov 8  }
  0x1a   :  { %v1090_v3 = vld [vmem:[#allocation5 + $0xf8] sm:$0xff]  ;;  %348 = vmatpush.bf16.msra.mxu2 %v1082_v2  ;;  %v1089_v7 = vld [vmem:[#allocation5 + $0xf0] sm:$0xff]  ;;  %v1080_v10 = vld [vmem:[#allocation5 + $0xa8] sm:$0xff] }
  0x1b   :  { %409 = vmatpush.bf16.msra.mxu3 %v1090_v3  ;;  %v1088_v11 = vld [vmem:[#allocation5 + $0xe8] sm:$0xff]  ;;  %v1063_v12 = vld [vmem:[#allocation5 + $0x20] sm:$0xff]  ;;  %v1062_v16 = vld [vmem:[#allocation5 + $0x18] sm:$0xff] }
  0x1c   :  { %227 = vmatpush.bf16.msra.mxu0 %v1065_v4  ;;  %v1071_v13 = vld [vmem:[#allocation5 + $0x60] sm:$0xff]  ;;  %v1070_v17 = vld [vmem:[#allocation5 + $0x58] sm:$0xff]  ;;  %v1061_v20 = vld [vmem:[#allocation5 + $0x10] sm:$0xff] }
  0x1d   :  { %288 = vmatpush.bf16.msra.mxu1 %v1073_v5  ;;  %v1079_v14 = vld [vmem:[#allocation5 + $0xa0] sm:$0xff]  ;;  %v1078_v18 = vld [vmem:[#allocation5 + $0x98] sm:$0xff]  ;;  %v1069_v21 = vld [vmem:[#allocation5 + $0x50] sm:$0xff] }
  0x1e   :  { %349 = vmatpush.bf16.msra.mxu2 %v1081_v6  ;;  %v1087_v15 = vld [vmem:[#allocation5 + $0xe0] sm:$0xff]  ;;  %v1086_v19 = vld [vmem:[#allocation5 + $0xd8] sm:$0xff]  ;;  %v1077_v22 = vld [vmem:[#allocation5 + $0x90] sm:$0xff] }
  0x1f   :  { %410 = vmatpush.bf16.msra.mxu3 %v1089_v7  ;;  %v1085_v23 = vld [vmem:[#allocation5 + $0xd0] sm:$0xff]  ;;  %v1060_v24 = vld [vmem:[#allocation5 + $0x8] sm:$0xff]  ;;  %v1059_v28 = vld [vmem:[#allocation5] sm:$0xff] }
  0x20   :  { %228 = vmatpush.bf16.msra.mxu0 %v1064_v8  ;;  %v1068_v25 = vld [vmem:[#allocation5 + $0x48] sm:$0xff]  ;;  %v1067_v29 = vld [vmem:[#allocation5 + $0x40] sm:$0xff]  ;;  %v97_v34 = vld [vmem:[#allocation2] sm:$0xf] }
  0x21   :  { %289 = vmatpush.bf16.msra.mxu1 %v1072_v9  ;;  %v1076_v26 = vld [vmem:[#allocation5 + $0x88] sm:$0xff]  ;;  %v1075_v30 = vld [vmem:[#allocation5 + $0x80] sm:$0xff]  ;;  %v1097_v37 = vld [vmem:[#allocation8 + $0x30] sm:$0xff] }
  0x22   :  { %350 = vmatpush.bf16.msra.mxu2 %v1080_v10  ;;  %v1084_v27 = vld [vmem:[#allocation5 + $0xc8] sm:$0xff]  ;;  %v1083_v31 = vld [vmem:[#allocation5 + $0xc0] sm:$0xff]  ;;  %v1105_v38 = vld [vmem:[#allocation8 + $0x70] sm:$0xff] }
  0x23   :  { %411 = vmatpush.bf16.msra.mxu3 %v1088_v11  ;;  %v1098_v32 = vld [vmem:[#allocation8 + $0x38] sm:$0xff]  ;;  %v1113_v39 = vld [vmem:[#allocation8 + $0xb0] sm:$0xff]  ;;  %v1096_v41 = vld [vmem:[#allocation8 + $0x28] sm:$0xff] }
  0x24   :  { %229 = vmatpush.bf16.msra.mxu0 %v1063_v12  ;;  %v1106_v33 = vld [vmem:[#allocation8 + $0x78] sm:$0xff]  ;;  %v1121_v40 = vld [vmem:[#allocation8 + $0xf0] sm:$0xff]  ;;  %v1104_v42 = vld [vmem:[#allocation8 + $0x68] sm:$0xff] }
  0x25   :  { %290 = vmatpush.bf16.msra.mxu1 %v1071_v13  ;;  %v1114_v35 = vld [vmem:[#allocation8 + $0xb8] sm:$0xff]  ;;  %v1095_v43 = vld [vmem:[#allocation8 + $0x20] sm:$0xff]  ;;  %v1112_v45 = vld [vmem:[#allocation8 + $0xa8] sm:$0xff] }
  0x26   :  { %351 = vmatpush.bf16.msra.mxu2 %v1079_v14  ;;  %v1122_v36 = vld [vmem:[#allocation8 + $0xf8] sm:$0xff]  ;;  %v1103_v44 = vld [vmem:[#allocation8 + $0x60] sm:$0xff]  ;;  %v1120_v46 = vld [vmem:[#allocation8 + $0xe8] sm:$0xff] }
  0x27   :  { %412 = vmatpush.bf16.msra.mxu3 %v1087_v15  ;;  %v1094_v47 = vld [vmem:[#allocation8 + $0x18] sm:$0xff]  ;;  %v1111_v49 = vld [vmem:[#allocation8 + $0xa0] sm:$0xff]  ;;  %v1093_v51 = vld [vmem:[#allocation8 + $0x10] sm:$0xff] }
  0x28   :  { %230 = vmatpush.bf16.msra.mxu0 %v1062_v16  ;;  %v1102_v48 = vld [vmem:[#allocation8 + $0x58] sm:$0xff]  ;;  %v1119_v50 = vld [vmem:[#allocation8 + $0xe0] sm:$0xff]  ;;  %v1101_v52 = vld [vmem:[#allocation8 + $0x50] sm:$0xff] }
  0x29   :  { %291 = vmatpush.bf16.msra.mxu1 %v1070_v17  ;;  %v1110_v53 = vld [vmem:[#allocation8 + $0x98] sm:$0xff]  ;;  %v1092_v55 = vld [vmem:[#allocation8 + $0x8] sm:$0xff]  ;;  %v1109_v57 = vld [vmem:[#allocation8 + $0x90] sm:$0xff] }
  0x2a   :  { %352 = vmatpush.bf16.msra.mxu2 %v1078_v18  ;;  %v1118_v54 = vld [vmem:[#allocation8 + $0xd8] sm:$0xff]  ;;  %v1100_v56 = vld [vmem:[#allocation8 + $0x48] sm:$0xff]  ;;  %v1117_v58 = vld [vmem:[#allocation8 + $0xd0] sm:$0xff] }
  0x2b   :  { %413 = vmatpush.bf16.msra.mxu3 %v1086_v19  ;;  %v1091_v59 = vld [vmem:[#allocation8] sm:$0xff]  ;;  %v1108_v61 = vld [vmem:[#allocation8 + $0x88] sm:$0xff]  ;;  %v1135_v1 = vld [vmem:[#allocation7] ss:$0 sm:$0xff] }
  0x2c   :  { %231 = vmatpush.bf16.msra.mxu0 %v1061_v20  ;;  %v1099_v60 = vld [vmem:[#allocation8 + $0x40] sm:$0xff]  ;;  %v1116_v62 = vld [vmem:[#allocation8 + $0xc8] sm:$0xff]  ;;  %v1136_v2 = vld [vmem:[#allocation7 + $0x1] ss:$0 sm:$0xff] }
  0x2d   :  { %292 = vmatpush.bf16.msra.mxu1 %v1069_v21  ;;  %v1107_v63 = vld [vmem:[#allocation8 + $0x80] sm:$0xff]  ;;  %v1137_v9 = vld [vmem:[#allocation7 + $0x2] ss:$0 sm:$0xff]  ;;  %v1138_v10 = vld [vmem:[#allocation7 + $0x3] ss:$0 sm:$0xff] }
  0x2e   :  { %353 = vmatpush.bf16.msra.mxu2 %v1077_v22  ;;  %v1115_v0 = vld [vmem:[#allocation8 + $0xc0] sm:$0xff] }
  0x2f   :  { %414 = vmatpush.bf16.msra.mxu3 %v1085_v23 }
  0x30   :  { %232 = vmatpush.bf16.msra.mxu0 %v1060_v24 }
  0x31   :  { %293 = vmatpush.bf16.msra.mxu1 %v1068_v25 }
  0x32   :  { %354 = vmatpush.bf16.msra.mxu2 %v1076_v26 }
  0x33   :  { %415 = vmatpush.bf16.msra.mxu3 %v1084_v27 }
  0x34   :  { %233 = vmatpush.bf16.msra.mxu0 %v1059_v28 }
  0x35   :  { %294 = vmatpush.bf16.msra.mxu1 %v1067_v29 }
  0x36   :  { %355 = vmatpush.bf16.msra.mxu2 %v1075_v30 }
  0x37   :  { %416 = vmatpush.bf16.msra.mxu3 %v1083_v31  ;;  %234 = vmatmul.bf16.vlgmr.msra.gmra.mxu0 %v97_v34 }
  0x38   :  { %578 = vmatpush.bf16.msrb.mxu0 %v1098_v32  ;;  %295 = vmatmul.bf16.vlgmr.msra.gmra.mxu1 %v97_v34 }
  0x39   :  { %639 = vmatpush.bf16.msrb.mxu1 %v1106_v33  ;;  %356 = vmatmul.bf16.vlgmr.msra.gmra.mxu2 %v97_v34 }
  0x3a   :  { %417 = vmatmul.bf16.vlgmr.msra.gmra.mxu3 %v97_v34  ;;  %700 = vmatpush.bf16.msrb.mxu2 %v1114_v35 }
  0x3b   :  { %761 = vmatpush.bf16.msrb.mxu3 %v1122_v36 }
  0x3c   :  { %579 = vmatpush.bf16.msrb.mxu0 %v1097_v37 }
  0x3d   :  { %640 = vmatpush.bf16.msrb.mxu1 %v1105_v38 }
  0x3e   :  { %701 = vmatpush.bf16.msrb.mxu2 %v1113_v39 }
  0x3f   :  { %762 = vmatpush.bf16.msrb.mxu3 %v1121_v40 }
  0x40   :  { %580 = vmatpush.bf16.msrb.mxu0 %v1096_v41  ;;  %v1139_v41 = vld [vmem:[#allocation10] ss:$0 sm:$0xff] }
  0x41   :  { %641 = vmatpush.bf16.msrb.mxu1 %v1104_v42  ;;  %v1140_v42 = vld [vmem:[#allocation10 + $0x1] ss:$0 sm:$0xff] }
  0x42   :  { %702 = vmatpush.bf16.msrb.mxu2 %v1112_v45 }
  0x43   :  { %763 = vmatpush.bf16.msrb.mxu3 %v1120_v46 }
  0x44   :  { %581 = vmatpush.bf16.msrb.mxu0 %v1095_v43 }
  0x45   :  { %642 = vmatpush.bf16.msrb.mxu1 %v1103_v44 }
  0x46   :  { %703 = vmatpush.bf16.msrb.mxu2 %v1111_v49  ;;  %v1141_v49 = vld [vmem:[#allocation10 + $0x2] ss:$0 sm:$0xff] }
  0x47   :  { %764 = vmatpush.bf16.msrb.mxu3 %v1119_v50  ;;  %v1142_v50 = vld [vmem:[#allocation10 + $0x3] ss:$0 sm:$0xff] }
  0x48   :  { %582 = vmatpush.bf16.msrb.mxu0 %v1094_v47 }
  0x49   :  { %643 = vmatpush.bf16.msrb.mxu1 %v1102_v48 }
  0x4a   :  { %704 = vmatpush.bf16.msrb.mxu2 %v1110_v53 }
  0x4b   :  { %765 = vmatpush.bf16.msrb.mxu3 %v1118_v54 }
  0x4c   :  { %583 = vmatpush.bf16.msrb.mxu0 %v1093_v51 }
  0x4d   :  { %644 = vmatpush.bf16.msrb.mxu1 %v1101_v52 }
  0x4e   :  { %705 = vmatpush.bf16.msrb.mxu2 %v1109_v57 }
  0x4f   :  { %766 = vmatpush.bf16.msrb.mxu3 %v1117_v58 }
  0x50   :  { %584 = vmatpush.bf16.msrb.mxu0 %v1092_v55 }
  0x51   :  { %645 = vmatpush.bf16.msrb.mxu1 %v1100_v56 }
  0x52   :  { %706 = vmatpush.bf16.msrb.mxu2 %v1108_v61 }
  0x53   :  { %767 = vmatpush.bf16.msrb.mxu3 %v1116_v62 }
  0x54   :  { %585 = vmatpush.bf16.msrb.mxu0 %v1091_v59 }
  0x55   :  { %646 = vmatpush.bf16.msrb.mxu1 %v1099_v60 }
  0x56   :  { %707 = vmatpush.bf16.msrb.mxu2 %v1107_v63 }
  0x57   :  { %768 = vmatpush.bf16.msrb.mxu3 %v1115_v0 }
  0xb4   :  { %v235_v3 = vpop.f32.mrf.mxu0 }
  0xb5   :  { %v296_v4 = vpop.f32.mrf.mxu1  ;;  %v236_v5 = vadd.f32 %v1135_v1, %v235_v3 }
  0xb6   :  { %v297_v6 = vadd.f32 %v1136_v2, %v296_v4 }
  0xb7   :  { %v426_v7 = vmin.f32 %v236_v5, 0.0  ;;  %vm422_vm0 = vcmp.gt.f32.partialorder %v236_v5, 0.0 }
  0xb8   :  { %v427_v8 = vmin.f32 %v297_v6, 0.0  ;;  %vm423_vm1 = vcmp.gt.f32.partialorder %v297_v6, 0.0 }
  0xb9   :  { %v430_v11 = vmul.f32 1.442695, %v426_v7 }
  0xba   :  { %v432_v12 = vmul.f32 1.442695, %v427_v8 }
  0xbb   :  { %1143 = vpow2.f32 %v430_v11 }
  0xbc   :  { %v357_v13 = vpop.f32.mrf.mxu2  ;;  %1145 = vpow2.f32 %v432_v12  ;;  %v237_v17 = vpop.f32.mrf.mxu0 }
  0xbd   :  { %v418_v14 = vpop.f32.mrf.mxu3  ;;  %v358_v15 = vadd.f32 %v1137_v9, %v357_v13  ;;  %v298_v18 = vpop.f32.mrf.mxu1 }
  0xbe   :  { %v419_v16 = vadd.f32 %v1138_v10, %v418_v14 }
  0xbf   :  { %v428_v19 = vmin.f32 %v358_v15, 0.0  ;;  %vm424_vm2 = vcmp.gt.f32.partialorder %v358_v15, 0.0 }
  0xc0   :  { %v429_v20 = vmin.f32 %v419_v16, 0.0  ;;  %vm425_vm3 = vcmp.gt.f32.partialorder %v419_v16, 0.0 }
  0xc1   :  { %v434_v21 = vmul.f32 1.442695, %v428_v19  ;;  %v1144_v23 = vpop.eup %1143 }
  0xc2   :  { %v436_v22 = vmul.f32 1.442695, %v429_v20  ;;  %v1146_v24 = vpop.eup %1145  ;;  %v927_v25 = vadd.f32 -1.0, %v1144_v23 }
  0xc3   :  { %1147 = vpow2.f32 %v434_v21  ;;  %v928_v26 = vadd.f32 -1.0, %v1146_v24 }
  0xc4   :  { %1149 = vpow2.f32 %v436_v22  ;;  %v359_v27 = vpop.f32.mrf.mxu2  ;;  %v442_v29 = vsel %vm422_vm0, %v236_v5, %v927_v25 }
  0xc5   :  { %v420_v28 = vpop.f32.mrf.mxu3  ;;  %v446_v30 = vpack.c.bf16 %v442_v29, %v442_v29  ;;  %v443_v31 = vsel %vm423_vm1, %v297_v6, %v928_v26 }
  0xc6   :  { %v447_v32 = vpack.c.bf16 %v443_v31, %v443_v31 }
  0xc7   :  { %586 = vmatmul.bf16.vlgmr.msrb.gmra.mxu0 %v446_v30 }
  0xc8   :  { %647 = vmatmul.bf16.vlgmr.msrb.gmra.mxu1 %v447_v32 }
  0xc9   :  { %v1148_v33 = vpop.eup %1147 }
  0xca   :  { %v1150_v34 = vpop.eup %1149  ;;  %v929_v35 = vadd.f32 -1.0, %v1148_v33 }
  0xcb   :  { %v930_v36 = vadd.f32 -1.0, %v1150_v34 }
  0xcc   :  { %v444_v37 = vsel %vm424_vm2, %v358_v15, %v929_v35 }
  0xcd   :  { %v448_v38 = vpack.c.bf16 %v444_v37, %v444_v37  ;;  %v445_v39 = vsel %vm425_vm3, %v419_v16, %v930_v36 }
  0xce   :  { %v449_v40 = vpack.c.bf16 %v445_v39, %v445_v39 }
  0xcf   :  { %708 = vmatmul.bf16.vlgmr.msrb.gmra.mxu2 %v448_v38 }
  0xd0   :  { %769 = vmatmul.bf16.vlgmr.msrb.gmra.mxu3 %v449_v40 }
 0x144   :  { %v587_v43 = vpop.f32.mrf.mxu0 }
 0x145   :  { %v588_v44 = vadd.f32 %v1139_v41, %v587_v43  ;;  %v648_v45 = vpop.f32.mrf.mxu1 }
 0x146   :  { %v649_v46 = vadd.f32 %v1140_v42, %v648_v45 }
 0x147   :  { %774 = vst [vmem:[#allocation11] sm:$0xff] %v588_v44 }
 0x148   :  { %775 = vst [vmem:[#allocation11 + $0x8] sm:$0xff] %v649_v46 }
 0x14c   :  { %v589_v47 = vpop.f32.mrf.mxu0 }
 0x14d   :  { %v650_v48 = vpop.f32.mrf.mxu1 }
 0x152   :  { %v709_v51 = vpop.f32.mrf.mxu2 }
 0x153   :  { %v710_v52 = vadd.f32 %v1141_v49, %v709_v51  ;;  %v770_v53 = vpop.f32.mrf.mxu3 }
 0x154   :  { %v771_v54 = vadd.f32 %v1142_v50, %v770_v53 }
 0x155   :  { %776 = vst [vmem:[#allocation11 + $0x10] sm:$0xff] %v710_v52 }
 0x156   :  { %777 = vst [vmem:[#allocation11 + $0x18] sm:$0xff] %v771_v54 }
 0x157   :  { %790 = dma.vmem_to_hbm [thread:$0]  %s783_s4, 512, %s785_s21, [#allocation4], %s1313_s22, %s1313_s22, %s1314_s23  }
 0x15a   :  { %v711_v55 = vpop.f32.mrf.mxu2 }
 0x15b   :  { %v772_v56 = vpop.f32.mrf.mxu3 }
 0x15c   :  { %1301 = dma.done.wait [#allocation4], 512  }
 0x15d   :  { %1302 = vsyncadd [#allocation4], 4294966784 }
 0x15e   :  { %795 = vsyncpa [#allocation3], 1 }
 0x15f   :  { %796 = vsyncpa [#allocation6], 1 }
 0x160   :  { %797 = vsyncpa [#allocation9], 1 }
 0x161   :  { %798 = vsyncpa [#allocation4], 1 }

</bundles_post_ra>
